<compile_context>
chip_gen: v7x
topology: tpu7x:2x2x1
jax: 0.10.0
libtpu: 0.0.40
codegen_flags: <defaults>
</compile_context>

<pallas_src>
import jax
import jax.numpy as jnp
from jax.experimental import pallas as pl
from jax.experimental.pallas import tpu as pltpu


def _head_kernel(x_ref, w_ref, o_ref):
    # x_ref: [tb, tr]   flattened NCHW feature block (input dtype)
    # w_ref: [1, R]     full pre-scaled weight, VMEM-resident (DMA'd once)
    # o_ref: [tb, 1]    f32 logits; block index constant along k -> resident accumulator
    k = pl.program_id(1)
    tr = x_ref.shape[1]

    @pl.when(k == 0)
    def _():
        o_ref[...] = jnp.zeros_like(o_ref)

    start = k * tr
    if tr % 128 == 0:
        start = pl.multiple_of(start, 128)
    x = x_ref[...].astype(jnp.float32)
    w = w_ref[:, pl.ds(start, tr)].astype(jnp.float32)
    # VPU multiply + XLU cross-lane reduce; MXU stays off the critical path.
    o_ref[...] += jnp.sum(x * w, axis=-1, keepdims=True)


def prepare_head_weight(w_1c: jax.Array, H: int, W: int) -> jax.Array:
    """Build the pre-scaled, channel-repeated weight ONCE at parameter-load time.

    w_1c: torch-layout Linear weight [1, C].  Returns [1, C*H*W] f32 with the
    avg-pool 1/(H*W) folded in, so the whole head is a single weighted reduction.
    """
    C = w_1c.shape[-1]
    HW = H * W
    return jnp.repeat(w_1c.reshape(C).astype(jnp.float32) / HW, HW).reshape(1, C * HW)


def _pick_tiles(B_pad: int, R: int, itemsize: int, sub: int):
    """Pick (tb, tr): ~1-2 MiB of x per block, lane-dense tr, sublane-dense tb."""
    TARGET = 2 << 20    # ~2 MiB x block: BW curve flattens at 1-4 MiB blocks
    BUDGET = 20 << 20   # double-buffered x budget; safe under v7x's 32 MiB scoped VMEM

    # Reduction tile: largest multiple of 128 that divides R (cap 16384 lanes).
    tr = None
    t = 128
    while t <= min(R, 16384):
        if R % t == 0:
            tr = t
        t += 128
    if tr is None:
        # R = 1024*H*W is always a multiple of 128 for this module; fallback is a
        # single reduction step (block equals full array dim, allowed by Mosaic).
        tr = R

    # Batch tile: multiple of `sub` sublanes sized toward TARGET bytes per block.
    tb = (TARGET // max(tr * itemsize, 1)) // sub * sub
    tb = int(max(sub, min(tb, B_pad)))
    if B_pad >= 2 * sub:
        tb = min(tb, B_pad // 2)          # keep >=2 batch blocks (v7x megacore)
    while B_pad % tb != 0:
        tb -= sub
    # Respect the double-buffered VMEM budget (only binds for pathological shapes).
    while tb > sub and 2 * tb * tr * itemsize > BUDGET:
        tb -= sub
        while B_pad % tb != 0:
            tb -= sub
    return tb, tr


def mydesnet_head(feats_nchw: jax.Array, w_rep: jax.Array) -> jax.Array:
    """feats_nchw: [B, C, H, W] backbone features; w_rep: [1, C*H*W] from prepare_head_weight."""
    B, C, H, W = feats_nchw.shape
    R = C * H * W
    assert w_rep.shape == (1, R), (w_rep.shape, R)

    # NCHW is contiguous: this reshape is a free view (no materialized transpose).
    x_flat = feats_nchw.reshape(B, R)

    # Pad batch to the sublane quantum (8 for 32-bit, 16 for 16-bit inputs) so every
    # vreg sublane is used; zero rows give zero logits and are sliced off at the end.
    itemsize = x_flat.dtype.itemsize
    sub = 8 if itemsize >= 4 else 16
    B_pad = ((B + sub - 1) // sub) * sub
    if B_pad != B:
        x_flat = jnp.pad(x_flat, ((0, B_pad - B), (0, 0)))

    tb, tr = _pick_tiles(B_pad, R, itemsize, sub)
    grid = (B_pad // tb, R // tr)          # batch axis parallel, reduction last

    out = pl.pallas_call(
        _head_kernel,
        out_shape=jax.ShapeDtypeStruct((B_pad, 1), jnp.float32),
        grid_spec=pltpu.PrefetchScalarGridSpec(
            num_scalar_prefetch=0,
            grid=grid,
            in_specs=[
                pl.BlockSpec((tb, tr), lambda i, k: (i, k)),
                pl.BlockSpec((1, R), lambda i, k: (0, 0)),   # weight fetched once, VMEM-resident
            ],
            out_specs=pl.BlockSpec((tb, 1), lambda i, k: (i, 0)),
        ),
        compiler_params=pltpu.CompilerParams(
            dimension_semantics=("parallel", "arbitrary"),
        ),
        cost_estimate=pl.CostEstimate(
            flops=2 * B_pad * R,
            transcendentals=0,
            bytes_accessed=B_pad * R * itemsize + R * 4 + B_pad * 4,
        ),
    )(x_flat, w_rep)
    return out[:B]


if __name__ == "__main__":
    # TODO(synk): md_layer is an arbitrary external backbone (`model` ctor arg,
    # children()[:-1]); it has no definable Pallas equivalent here, so the input
    # below is treated as the backbone's [B, 1024, H, W] feature-map output.
    B, C, H, W = 2, 1024, 4, 4

    key = jax.random.PRNGKey(0)
    k_x, k_w = jax.random.split(key)
    feats = jax.random.normal(k_x, (B, C, H, W), dtype=jnp.float32)
    # deterministic Linear(1024, 1, bias=False) weight, torch layout [out=1, in=1024]
    w = jax.random.uniform(k_w, (1, C), dtype=jnp.float32,
                           minval=-1.0 / jnp.sqrt(C), maxval=1.0 / jnp.sqrt(C))

    # Weight preprocessing happens once, at "parameter load" time (not per forward).
    w_rep = jax.block_until_ready(prepare_head_weight(w, H, W))

    out = mydesnet_head(feats, w_rep)
    out = jax.block_until_ready(out)

    # pure-JAX reference of the same forward semantics
    ref = jnp.mean(feats, axis=(2, 3)) @ w.T  # [B, 1]
    assert out.shape == (B, 1), out.shape
    assert jnp.allclose(out, ref, atol=1e-4, rtol=1e-4), (out, ref)

    print("KERNEL_OK")
</pallas_src>

<mosaic_0001>
module attributes {stable_mosaic.version = 11 : i64} {
  func.func @_head_kernel(%arg0: i32, %arg1: i32, %arg2: memref<8x16384xf32, #tpu.memory_space<vmem>>, %arg3: memref<1x16384xf32, #tpu.memory_space<vmem>>, %arg4: memref<8x1xf32, #tpu.memory_space<vmem>>) attributes {dimension_semantics = [#tpu.dimension_semantics<parallel>, #tpu.dimension_semantics<arbitrary>], iteration_bounds = array<i64: 1, 1>, scalar_prefetch = 0 : i64, scratch_operands = 0 : i64, tpu.core_type = #tpu.core_type<tc>, window_params = [{transform_indices = @transform_0, window_bounds = array<i64: 8, 16384>}, {pipeline_mode = #tpu.pipeline_mode<synchronous>, transform_indices = @transform_1, window_bounds = array<i64: 1, 16384>}, {transform_indices = @transform_2, window_bounds = array<i64: 8, 1>}]} {
    %c0_i32 = arith.constant 0 : i32
    %0 = arith.cmpi eq, %arg1, %c0_i32 : i32
    %1 = arith.extui %0 : i1 to i32
    %c0_i32_0 = arith.constant 0 : i32
    %2 = arith.cmpi ne, %1, %c0_i32_0 : i32
    scf.if %2 {
      %cst_7 = arith.constant 0.000000e+00 : f32
      %15 = vector.broadcast %cst_7 : f32 to vector<8x1xf32>
      %c0_8 = arith.constant 0 : index
      %c0_9 = arith.constant 0 : index
      %16 = vector.load %arg4[%c0_8, %c0_9] : memref<8x1xf32, #tpu.memory_space<vmem>>, vector<8x1xf32>
      tpu.vector_store %arg4[%c0_8, %c0_9], %15 {strides = array<i32>} : memref<8x1xf32, #tpu.memory_space<vmem>>, vector<8x1xf32>,
    } else {
    }
    %c16384_i32 = arith.constant 16384 : i32
    %3 = arith.muli %arg1, %c16384_i32 : i32
    %4 = tpu.assume_multiple %3, 128 : i32
    %c0 = arith.constant 0 : index
    %c0_1 = arith.constant 0 : index
    %5 = vector.load %arg2[%c0, %c0_1] : memref<8x16384xf32, #tpu.memory_space<vmem>>, vector<8x16384xf32>
    %c0_2 = arith.constant 0 : index
    %6 = arith.index_cast %4 : i32 to index
    %7 = vector.load %arg3[%c0_2, %6] : memref<1x16384xf32, #tpu.memory_space<vmem>>, vector<1x16384xf32>
    %c0_3 = arith.constant 0 : index
    %c0_4 = arith.constant 0 : index
    %8 = vector.load %arg4[%c0_3, %c0_4] : memref<8x1xf32, #tpu.memory_space<vmem>>, vector<8x1xf32>
    %9 = vector.broadcast %7 : vector<1x16384xf32> to vector<8x16384xf32>
    %10 = arith.mulf %5, %9 : vector<8x16384xf32>
    %cst = arith.constant dense<0.000000e+00> : vector<8xf32>
    %11 = vector.multi_reduction <add>, %10, %cst [1] : vector<8x16384xf32> to vector<8xf32>
    %12 = vector.shape_cast %11 : vector<8xf32> to vector<8x1xf32>
    %13 = arith.addf %8, %12 : vector<8x1xf32>
    %c0_5 = arith.constant 0 : index
    %c0_6 = arith.constant 0 : index
    %14 = vector.load %arg4[%c0_5, %c0_6] : memref<8x1xf32, #tpu.memory_space<vmem>>, vector<8x1xf32>
    tpu.vector_store %arg4[%c0_5, %c0_6], %13 {strides = array<i32>} : memref<8x1xf32, #tpu.memory_space<vmem>>, vector<8x1xf32>,
    return
  }
  func.func @transform_0(%arg0: i32, %arg1: i32) -> (i32, i32) {
    %c0_i32 = arith.constant 0 : i32
    return %arg0, %arg1 : i32, i32
  }
  func.func @transform_1(%arg0: i32, %arg1: i32) -> (i32, i32) {
    %c0_i32 = arith.constant 0 : i32
    %c0_i32_0 = arith.constant 0 : i32
    %c0_i32_1 = arith.constant 0 : i32
    return %c0_i32, %c0_i32_0 : i32, i32
  }
  func.func @transform_2(%arg0: i32, %arg1: i32) -> (i32, i32) {
    %c0_i32 = arith.constant 0 : i32
    %c0_i32_0 = arith.constant 0 : i32
    return %arg0, %c0_i32 : i32, i32
  }
}

</mosaic_0001>

<bundles_post_ra>
// kernel: tpu_custom_call.1
= control target key start
LH: loop header
LB: loop body
LE: loop exit
PB: predicated region body
PF: predicated region fallthrough
CT: control target
= control target key end

     0   :  { %7 = vsyncpa [#allocation3], 0  ;;  %s1361_s0 = inlined_call_operand.hbm [shape: f32[8,16384], index: 0, kind: input, shape index: {}]   ;;  %s1362_s1 = inlined_call_operand.hbm [shape: f32[1,16384], index: 1, kind: input, shape index: {}]   ;;  %s1363_s2 = inlined_call_operand.vmem [shape: f32[8,1], index: 2, kind: output, shape index: {}]  }
   0x1   :  { %8 = vsyncpa [#allocation5], 0  ;;  %s1164_s9 = smov [#allocation2]   ;;  %s1165_s11 = smov [#allocation4]  }
   0x2   :  { %s15_s10 = sshll.u32 %s1164_s9, 4  ;;  %s25_s12 = sshll.u32 %s1165_s11, 4  ;;  %s16_s10 = int_to_ptr.vmem [resolvable:$true] %s15_s10  ;;  %s26_s12 = int_to_ptr.vmem [resolvable:$true] %s25_s12 }
   0x3   :  { %s1116_s15 = scalar_lea.hbm %s1361_s0, 16384 }
   0x4   :  { %p1117_p0 = scmp.ne.s32.totalorder %s1361_s0, %s1116_s15  ;;  %p1120_p1 = scmp.lt.u32.totalorder %s1116_s15, %s1361_s0 }
   0x6   :  { %p1122_p2 = pnand %p1120_p1, %p1117_p0 }
   0x8   :  { %1125 = shalt.err (!%p1122_p2)
}
   0x9   :  { %s1126_s20 = scalar_lea.vmem %s16_s10, 16384  ;;  %p1131_p4 = scmp.lt.s32.totalorder %s16_s10, %s16_s10 }
   0xa   :  { %p1127_p3 = scmp.ne.s32.totalorder %s16_s10, %s1126_s20  ;;  %p1132_p5 = scmp.lt.s32.totalorder %s1126_s20, %s1126_s20 }
   0xc   :  { %p1133_p6 = por %p1132_p5, %p1131_p4 }
   0xe   :  { %p1134_p7 = pnand %p1133_p6, %p1127_p3 }
  0x10   :  { %1137 = shalt.err (!%p1134_p7)
}
  0x11   :  { %18 = dma.hbm_to_vmem [thread:$0]  %s1361_s0, 16384, %s16_s10, [#allocation3]  }
  0x12   :  { %s1138_s25 = scalar_lea.hbm %s1362_s1, 2048 }
  0x13   :  { %p1139_p8 = scmp.ne.s32.totalorder %s1362_s1, %s1138_s25  ;;  %p1142_p9 = scmp.lt.u32.totalorder %s1138_s25, %s1362_s1 }
  0x15   :  { %p1144_p10 = pnand %p1142_p9, %p1139_p8 }
  0x17   :  { %1147 = shalt.err (!%p1144_p10)
}
  0x18   :  { %s1148_s30 = scalar_lea.vmem %s26_s12, 2048  ;;  %p1153_p12 = scmp.lt.s32.totalorder %s26_s12, %s26_s12 }
  0x19   :  { %p1149_p11 = scmp.ne.s32.totalorder %s26_s12, %s1148_s30  ;;  %p1154_p13 = scmp.lt.s32.totalorder %s1148_s30, %s1148_s30 }
  0x1b   :  { %p1155_p0 = por %p1154_p13, %p1153_p12 }
  0x1d   :  { %p1156_p1 = pnand %p1155_p0, %p1149_p11 }
  0x1f   :  { %1159 = shalt.err (!%p1156_p1)
}
  0x20   :  { %28 = dma.hbm_to_vmem [thread:$0]  %s1362_s1, 2048, %s26_s12, [#allocation5]  }
  0x21   :  { %1160 = dma.done.wait [#allocation3], 16384  }
  0x22   :  { %1161 = vsyncadd [#allocation3], 4294950912 }
  0x23   :  { %1162 = dma.done.wait [#allocation5], 2048  }
  0x24   :  { %1163 = vsyncadd [#allocation5], 4294965248  ;;  %vm39_vm0 = vcmask 7168   ;;  %v1166_v0 = vmov 0.0   ;;  %v206_v1 = vlaneseq  ;;  %v173_v5 = vld [vmem:[#allocation4] sm:$0xff]  ;;  %v43_v11 = vld [vmem:[#allocation2 + $0x8] sm:$0xff] }
  0x25   :  { %40 = vst.msk [vmem:[%s1363_s2] sm:$0xff] %vm39_vm0, %v1166_v0  ;;  %v42_v10 = vld [vmem:[#allocation2] sm:$0xff]  ;;  %v44_v14 = vld [vmem:[#allocation2 + $0x10] sm:$0xff]  ;;  %v45_v19 = vld [vmem:[#allocation2 + $0x18] sm:$0xff] }
  0x26   :  { %v207_v2 = vshrl.u32 %v206_v1, 7  ;;  %v46_v23 = vld [vmem:[#allocation2 + $0x20] sm:$0xff]  ;;  %v47_v28 = vld [vmem:[#allocation2 + $0x28] sm:$0xff]  ;;  %v48_v32 = vld [vmem:[#allocation2 + $0x30] sm:$0xff] }
  0x27   :  { %v174_v33 = vld [vmem:[#allocation4 + $0x8] sm:$0xff]  ;;  %v49_v37 = vld [vmem:[#allocation2 + $0x38] sm:$0xff]  ;;  %v50_v41 = vld [vmem:[#allocation2 + $0x40] sm:$0xff] }
  0x28   :  { %v1210_v3 = vsub.s32 0, %v207_v2  ;;  %v1212_v4 = vsub.s32 1, %v207_v2  ;;  %v1214_v6 = vsub.s32 2, %v207_v2  ;;  %v1218_v9 = vsub.s32 3, %v207_v2  ;;  %v51_v45 = vld [vmem:[#allocation2 + $0x48] sm:$0xff]  ;;  %v52_v49 = vld [vmem:[#allocation2 + $0x50] sm:$0xff] }
  0x29   :  { %v1221_v13 = vsub.s32 4, %v207_v2  ;;  %v1224_v16 = vsub.s32 5, %v207_v2  ;;  %v1227_v21 = vsub.s32 6, %v207_v2  ;;  %v1230_v25 = vsub.s32 7, %v207_v2  ;;  %v53_v53 = vld [vmem:[#allocation2 + $0x58] sm:$0xff]  ;;  %v54_v57 = vld [vmem:[#allocation2 + $0x60] sm:$0xff] }
  0x2a   :  { %v209_v7 = vrot.slane %v173_v5, %v1210_v3  ;;  %v213_v8 = vrot.slane %v173_v5, %v1212_v4  ;;  %v217_v12 = vrot.slane %v173_v5, %v1214_v6  ;;  %v221_v15 = vrot.slane %v173_v5, %v1218_v9  ;;  %v55_v61 = vld [vmem:[#allocation2 + $0x68] sm:$0xff]  ;;  %v56_v1 = vld [vmem:[#allocation2 + $0x70] sm:$0xff] }
  0x2b   :  { %v225_v20 = vrot.slane %v173_v5, %v1221_v13  ;;  %v229_v24 = vrot.slane %v173_v5, %v1224_v16  ;;  %v233_v29 = vrot.slane %v173_v5, %v1227_v21  ;;  %v237_v34 = vrot.slane %v173_v5, %v1230_v25  ;;  %v175_v2 = vld [vmem:[#allocation4 + $0x10] sm:$0xff] }
  0x2c   :  { %v846_v17 = vmul.f32 %v209_v7, %v42_v10  ;;  %v847_v18 = vmul.f32 %v213_v8, %v43_v11  ;;  %v848_v22 = vmul.f32 %v217_v12, %v44_v14  ;;  %v849_v26 = vmul.f32 %v221_v15, %v45_v19  ;;  %v57_v10 = vld [vmem:[#allocation2 + $0x78] sm:$0xff]  ;;  %v58_v15 = vld [vmem:[#allocation2 + $0x80] sm:$0xff] }
  0x2d   :  { %v850_v30 = vmul.f32 %v225_v20, %v46_v23  ;;  %v851_v35 = vmul.f32 %v229_v24, %v47_v28  ;;  %v241_v38 = vrot.slane %v174_v33, %v1210_v3  ;;  %v852_v39 = vmul.f32 %v233_v29, %v48_v32  ;;  %v59_v20 = vld [vmem:[#allocation2 + $0x88] sm:$0xff] }
  0x2e   :  { %v974_v27 = vadd.f32 %v847_v18, %v846_v17  ;;  %v245_v42 = vrot.slane %v174_v33, %v1212_v4  ;;  %v853_v43 = vmul.f32 %v237_v34, %v49_v37  ;;  %v249_v46 = vrot.slane %v174_v33, %v1214_v6  ;;  %v62_v34 = vld [vmem:[#allocation2 + $0xa0] sm:$0xff] }
  0x2f   :  { %v854_v47 = vmul.f32 %v241_v38, %v50_v41  ;;  %v253_v50 = vrot.slane %v174_v33, %v1218_v9  ;;  %v257_v54 = vrot.slane %v174_v33, %v1221_v13  ;;  %v261_v58 = vrot.slane %v174_v33, %v1224_v16  ;;  %v63_v38 = vld [vmem:[#allocation2 + $0xa8] sm:$0xff] }
  0x30   :  { %v975_v31 = vadd.f32 %v974_v27, %v848_v22  ;;  %v855_v51 = vmul.f32 %v245_v42, %v51_v45  ;;  %v856_v55 = vmul.f32 %v249_v46, %v52_v49  ;;  %v265_v62 = vrot.slane %v174_v33, %v1227_v21  ;;  %v64_v42 = vld [vmem:[#allocation2 + $0xb0] sm:$0xff] }
  0x31   :  { %v857_v59 = vmul.f32 %v253_v50, %v53_v53  ;;  %v858_v63 = vmul.f32 %v257_v54, %v54_v57  ;;  %v269_v5 = vrot.slane %v174_v33, %v1230_v25  ;;  %v859_v7 = vmul.f32 %v261_v58, %v55_v61 }
  0x32   :  { %v976_v36 = vadd.f32 %v975_v31, %v849_v26  ;;  %v273_v11 = vrot.slane %v175_v2, %v1210_v3  ;;  %v860_v12 = vmul.f32 %v265_v62, %v56_v1  ;;  %v277_v17 = vrot.slane %v175_v2, %v1212_v4  ;;  %v60_v26 = vld [vmem:[#allocation2 + $0x90] sm:$0xff] }
  0x33   :  { %v861_v18 = vmul.f32 %v269_v5, %v57_v10  ;;  %v281_v22 = vrot.slane %v175_v2, %v1214_v6  ;;  %v285_v27 = vrot.slane %v175_v2, %v1218_v9  ;;  %v289_v31 = vrot.slane %v175_v2, %v1221_v13  ;;  %v70_v5 = vld [vmem:[#allocation2 + $0xe0] sm:$0xff] }
  0x34   :  { %v977_v40 = vadd.f32 %v976_v36, %v850_v30  ;;  %v862_v23 = vmul.f32 %v273_v11, %v58_v15  ;;  %v863_v28 = vmul.f32 %v277_v17, %v59_v20  ;;  %v61_v30 = vld [vmem:[#allocation2 + $0x98] sm:$0xff]  ;;  %v71_v11 = vld [vmem:[#allocation2 + $0xe8] sm:$0xff]  ;;  %v72_v17 = vld [vmem:[#allocation2 + $0xf0] sm:$0xff] }
  0x35   :  { %v864_v32 = vmul.f32 %v281_v22, %v60_v26  ;;  %v865_v36 = vmul.f32 %v285_v27, %v61_v30 }
  0x36   :  { %v978_v44 = vadd.f32 %v977_v40, %v851_v35  ;;  %v293_v35 = vrot.slane %v175_v2, %v1224_v16  ;;  %v866_v40 = vmul.f32 %v289_v31, %v62_v34 }
  0x38   :  { %v979_v48 = vadd.f32 %v978_v44, %v852_v39  ;;  %v297_v39 = vrot.slane %v175_v2, %v1227_v21  ;;  %v301_v44 = vrot.slane %v175_v2, %v1230_v25  ;;  %v867_v45 = vmul.f32 %v293_v35, %v63_v38 }
  0x3a   :  { %v980_v52 = vadd.f32 %v979_v48, %v853_v43  ;;  %v176_v43 = vld [vmem:[#allocation4 + $0x18] sm:$0xff]  ;;  %v868_v49 = vmul.f32 %v297_v39, %v64_v42 }
  0x3b   :  { %v305_v48 = vrot.slane %v176_v43, %v1210_v3 }
  0x3c   :  { %v981_v56 = vadd.f32 %v980_v52, %v854_v47  ;;  %v65_v47 = vld [vmem:[#allocation2 + $0xb8] sm:$0xff]  ;;  %v309_v52 = vrot.slane %v176_v43, %v1212_v4 }
  0x3d   :  { %v869_v53 = vmul.f32 %v301_v44, %v65_v47  ;;  %v78_v44 = vld [vmem:[#allocation2 + $0x120] sm:$0xff] }
  0x3e   :  { %v982_v60 = vadd.f32 %v981_v56, %v855_v51  ;;  %v66_v51 = vld [vmem:[#allocation2 + $0xc0] sm:$0xff]  ;;  %v313_v56 = vrot.slane %v176_v43, %v1214_v6 }
  0x3f   :  { %v870_v57 = vmul.f32 %v305_v48, %v66_v51  ;;  %v79_v48 = vld [vmem:[#allocation2 + $0x128] sm:$0xff] }
  0x40   :  { %v983_v0 = vadd.f32 %v982_v60, %v856_v55  ;;  %v67_v55 = vld [vmem:[#allocation2 + $0xc8] sm:$0xff]  ;;  %v317_v60 = vrot.slane %v176_v43, %v1218_v9 }
  0x41   :  { %v871_v61 = vmul.f32 %v309_v52, %v67_v55  ;;  %v80_v52 = vld [vmem:[#allocation2 + $0x130] sm:$0xff] }
  0x42   :  { %v984_v8 = vadd.f32 %v983_v0, %v857_v59  ;;  %v68_v59 = vld [vmem:[#allocation2 + $0xd0] sm:$0xff]  ;;  %v321_v0 = vrot.slane %v176_v43, %v1221_v13 }
  0x43   :  { %v872_v1 = vmul.f32 %v313_v56, %v68_v59 }
  0x44   :  { %v985_v14 = vadd.f32 %v984_v8, %v858_v63  ;;  %v69_v63 = vld [vmem:[#allocation2 + $0xd8] sm:$0xff] }
  0x45   :  { %v873_v8 = vmul.f32 %v317_v60, %v69_v63 }
  0x46   :  { %v986_v19 = vadd.f32 %v985_v14, %v859_v7  ;;  %v325_v7 = vrot.slane %v176_v43, %v1224_v16  ;;  %v874_v14 = vmul.f32 %v321_v0, %v70_v5 }
  0x48   :  { %v987_v24 = vadd.f32 %v986_v19, %v860_v12  ;;  %v329_v12 = vrot.slane %v176_v43, %v1227_v21  ;;  %v333_v19 = vrot.slane %v176_v43, %v1230_v25  ;;  %v875_v20 = vmul.f32 %v325_v7, %v71_v11 }
  0x4a   :  { %v988_v29 = vadd.f32 %v987_v24, %v861_v18  ;;  %v177_v18 = vld [vmem:[#allocation4 + $0x20] sm:$0xff]  ;;  %v876_v26 = vmul.f32 %v329_v12, %v72_v17 }
  0x4b   :  { %v337_v24 = vrot.slane %v177_v18, %v1210_v3 }
  0x4c   :  { %v989_v33 = vadd.f32 %v988_v29, %v862_v23  ;;  %v73_v23 = vld [vmem:[#allocation2 + $0xf8] sm:$0xff]  ;;  %v341_v29 = vrot.slane %v177_v18, %v1212_v4 }
  0x4d   :  { %v877_v30 = vmul.f32 %v333_v19, %v73_v23  ;;  %v86_v19 = vld [vmem:[#allocation2 + $0x160] sm:$0xff] }
  0x4e   :  { %v990_v37 = vadd.f32 %v989_v33, %v863_v28  ;;  %v74_v28 = vld [vmem:[#allocation2 + $0x100] sm:$0xff]  ;;  %v345_v33 = vrot.slane %v177_v18, %v1214_v6 }
  0x4f   :  { %v878_v34 = vmul.f32 %v337_v24, %v74_v28  ;;  %v87_v24 = vld [vmem:[#allocation2 + $0x168] sm:$0xff] }
  0x50   :  { %v991_v41 = vadd.f32 %v990_v37, %v864_v32  ;;  %v75_v32 = vld [vmem:[#allocation2 + $0x108] sm:$0xff]  ;;  %v349_v37 = vrot.slane %v177_v18, %v1218_v9 }
  0x51   :  { %v879_v38 = vmul.f32 %v341_v29, %v75_v32  ;;  %v88_v29 = vld [vmem:[#allocation2 + $0x170] sm:$0xff] }
  0x52   :  { %v992_v46 = vadd.f32 %v991_v41, %v865_v36  ;;  %v76_v36 = vld [vmem:[#allocation2 + $0x110] sm:$0xff]  ;;  %v353_v41 = vrot.slane %v177_v18, %v1221_v13 }
  0x53   :  { %v880_v42 = vmul.f32 %v345_v33, %v76_v36 }
  0x54   :  { %v993_v50 = vadd.f32 %v992_v46, %v866_v40  ;;  %v77_v40 = vld [vmem:[#allocation2 + $0x118] sm:$0xff] }
  0x55   :  { %v881_v46 = vmul.f32 %v349_v37, %v77_v40 }
  0x56   :  { %v994_v54 = vadd.f32 %v993_v50, %v867_v45  ;;  %v357_v45 = vrot.slane %v177_v18, %v1224_v16  ;;  %v882_v50 = vmul.f32 %v353_v41, %v78_v44 }
  0x58   :  { %v995_v58 = vadd.f32 %v994_v54, %v868_v49  ;;  %v361_v49 = vrot.slane %v177_v18, %v1227_v21  ;;  %v365_v54 = vrot.slane %v177_v18, %v1230_v25  ;;  %v883_v55 = vmul.f32 %v357_v45, %v79_v48 }
  0x5a   :  { %v996_v62 = vadd.f32 %v995_v58, %v869_v53  ;;  %v178_v53 = vld [vmem:[#allocation4 + $0x28] sm:$0xff]  ;;  %v884_v59 = vmul.f32 %v361_v49, %v80_v52 }
  0x5b   :  { %v369_v58 = vrot.slane %v178_v53, %v1210_v3 }
  0x5c   :  { %v997_v2 = vadd.f32 %v996_v62, %v870_v57  ;;  %v81_v57 = vld [vmem:[#allocation2 + $0x138] sm:$0xff]  ;;  %v373_v62 = vrot.slane %v178_v53, %v1212_v4 }
  0x5d   :  { %v885_v63 = vmul.f32 %v365_v54, %v81_v57  ;;  %v94_v54 = vld [vmem:[#allocation2 + $0x1a0] sm:$0xff] }
  0x5e   :  { %v998_v10 = vadd.f32 %v997_v2, %v871_v61  ;;  %v82_v61 = vld [vmem:[#allocation2 + $0x140] sm:$0xff]  ;;  %v377_v2 = vrot.slane %v178_v53, %v1214_v6 }
  0x5f   :  { %v886_v5 = vmul.f32 %v369_v58, %v82_v61  ;;  %v95_v58 = vld [vmem:[#allocation2 + $0x1a8] sm:$0xff] }
  0x60   :  { %v999_v15 = vadd.f32 %v998_v10, %v872_v1  ;;  %v83_v1 = vld [vmem:[#allocation2 + $0x148] sm:$0xff]  ;;  %v381_v10 = vrot.slane %v178_v53, %v1218_v9 }
  0x61   :  { %v887_v11 = vmul.f32 %v373_v62, %v83_v1  ;;  %v96_v62 = vld [vmem:[#allocation2 + $0x1b0] sm:$0xff] }
  0x62   :  { %v1000_v22 = vadd.f32 %v999_v15, %v873_v8  ;;  %v84_v8 = vld [vmem:[#allocation2 + $0x150] sm:$0xff]  ;;  %v385_v15 = vrot.slane %v178_v53, %v1221_v13 }
  0x63   :  { %v888_v17 = vmul.f32 %v377_v2, %v84_v8 }
  0x64   :  { %v1001_v27 = vadd.f32 %v1000_v22, %v874_v14  ;;  %v85_v14 = vld [vmem:[#allocation2 + $0x158] sm:$0xff] }
  0x65   :  { %v889_v22 = vmul.f32 %v381_v10, %v85_v14 }
  0x66   :  { %v1002_v31 = vadd.f32 %v1001_v27, %v875_v20  ;;  %v389_v20 = vrot.slane %v178_v53, %v1224_v16  ;;  %v890_v27 = vmul.f32 %v385_v15, %v86_v19 }
  0x68   :  { %v1003_v35 = vadd.f32 %v1002_v31, %v876_v26  ;;  %v393_v26 = vrot.slane %v178_v53, %v1227_v21  ;;  %v397_v31 = vrot.slane %v178_v53, %v1230_v25  ;;  %v891_v32 = vmul.f32 %v389_v20, %v87_v24 }
  0x6a   :  { %v1004_v39 = vadd.f32 %v1003_v35, %v877_v30  ;;  %v179_v30 = vld [vmem:[#allocation4 + $0x30] sm:$0xff]  ;;  %v892_v36 = vmul.f32 %v393_v26, %v88_v29 }
  0x6b   :  { %v401_v35 = vrot.slane %v179_v30, %v1210_v3 }
  0x6c   :  { %v1005_v43 = vadd.f32 %v1004_v39, %v878_v34  ;;  %v89_v34 = vld [vmem:[#allocation2 + $0x178] sm:$0xff]  ;;  %v405_v39 = vrot.slane %v179_v30, %v1212_v4 }
  0x6d   :  { %v893_v40 = vmul.f32 %v397_v31, %v89_v34  ;;  %v102_v31 = vld [vmem:[#allocation2 + $0x1e0] sm:$0xff] }
  0x6e   :  { %v1006_v47 = vadd.f32 %v1005_v43, %v879_v38  ;;  %v90_v38 = vld [vmem:[#allocation2 + $0x180] sm:$0xff]  ;;  %v409_v43 = vrot.slane %v179_v30, %v1214_v6 }
  0x6f   :  { %v894_v44 = vmul.f32 %v401_v35, %v90_v38  ;;  %v103_v35 = vld [vmem:[#allocation2 + $0x1e8] sm:$0xff] }
  0x70   :  { %v1007_v51 = vadd.f32 %v1006_v47, %v880_v42  ;;  %v91_v42 = vld [vmem:[#allocation2 + $0x188] sm:$0xff]  ;;  %v413_v47 = vrot.slane %v179_v30, %v1218_v9 }
  0x71   :  { %v895_v48 = vmul.f32 %v405_v39, %v91_v42  ;;  %v104_v39 = vld [vmem:[#allocation2 + $0x1f0] sm:$0xff] }
  0x72   :  { %v1008_v56 = vadd.f32 %v1007_v51, %v881_v46  ;;  %v92_v46 = vld [vmem:[#allocation2 + $0x190] sm:$0xff]  ;;  %v417_v51 = vrot.slane %v179_v30, %v1221_v13 }
  0x73   :  { %v896_v52 = vmul.f32 %v409_v43, %v92_v46 }
  0x74   :  { %v1009_v60 = vadd.f32 %v1008_v56, %v882_v50  ;;  %v93_v50 = vld [vmem:[#allocation2 + $0x198] sm:$0xff] }
  0x75   :  { %v897_v56 = vmul.f32 %v413_v47, %v93_v50 }
  0x76   :  { %v1010_v0 = vadd.f32 %v1009_v60, %v883_v55  ;;  %v421_v55 = vrot.slane %v179_v30, %v1224_v16  ;;  %v898_v60 = vmul.f32 %v417_v51, %v94_v54 }
  0x78   :  { %v1011_v7 = vadd.f32 %v1010_v0, %v884_v59  ;;  %v425_v59 = vrot.slane %v179_v30, %v1227_v21  ;;  %v429_v0 = vrot.slane %v179_v30, %v1230_v25  ;;  %v899_v1 = vmul.f32 %v421_v55, %v95_v58 }
  0x7a   :  { %v1012_v12 = vadd.f32 %v1011_v7, %v885_v63  ;;  %v180_v63 = vld [vmem:[#allocation4 + $0x38] sm:$0xff]  ;;  %v900_v8 = vmul.f32 %v425_v59, %v96_v62 }
  0x7b   :  { %v433_v7 = vrot.slane %v180_v63, %v1210_v3 }
  0x7c   :  { %v1013_v18 = vadd.f32 %v1012_v12, %v886_v5  ;;  %v97_v5 = vld [vmem:[#allocation2 + $0x1b8] sm:$0xff]  ;;  %v437_v12 = vrot.slane %v180_v63, %v1212_v4 }
  0x7d   :  { %v901_v14 = vmul.f32 %v429_v0, %v97_v5  ;;  %v110_v0 = vld [vmem:[#allocation2 + $0x220] sm:$0xff] }
  0x7e   :  { %v1014_v23 = vadd.f32 %v1013_v18, %v887_v11  ;;  %v98_v11 = vld [vmem:[#allocation2 + $0x1c0] sm:$0xff]  ;;  %v441_v18 = vrot.slane %v180_v63, %v1214_v6 }
  0x7f   :  { %v902_v19 = vmul.f32 %v433_v7, %v98_v11  ;;  %v111_v7 = vld [vmem:[#allocation2 + $0x228] sm:$0xff] }
  0x80   :  { %v1015_v28 = vadd.f32 %v1014_v23, %v888_v17  ;;  %v99_v17 = vld [vmem:[#allocation2 + $0x1c8] sm:$0xff]  ;;  %v445_v23 = vrot.slane %v180_v63, %v1218_v9 }
  0x81   :  { %v903_v24 = vmul.f32 %v437_v12, %v99_v17  ;;  %v112_v12 = vld [vmem:[#allocation2 + $0x230] sm:$0xff] }
  0x82   :  { %v1016_v33 = vadd.f32 %v1015_v28, %v889_v22  ;;  %v100_v22 = vld [vmem:[#allocation2 + $0x1d0] sm:$0xff]  ;;  %v449_v28 = vrot.slane %v180_v63, %v1221_v13 }
  0x83   :  { %v904_v29 = vmul.f32 %v441_v18, %v100_v22 }
  0x84   :  { %v1017_v37 = vadd.f32 %v1016_v33, %v890_v27  ;;  %v101_v27 = vld [vmem:[#allocation2 + $0x1d8] sm:$0xff] }
  0x85   :  { %v905_v33 = vmul.f32 %v445_v23, %v101_v27 }
  0x86   :  { %v1018_v41 = vadd.f32 %v1017_v37, %v891_v32  ;;  %v453_v32 = vrot.slane %v180_v63, %v1224_v16  ;;  %v906_v37 = vmul.f32 %v449_v28, %v102_v31 }
  0x88   :  { %v1019_v45 = vadd.f32 %v1018_v41, %v892_v36  ;;  %v457_v36 = vrot.slane %v180_v63, %v1227_v21  ;;  %v461_v41 = vrot.slane %v180_v63, %v1230_v25  ;;  %v907_v42 = vmul.f32 %v453_v32, %v103_v35 }
  0x8a   :  { %v1020_v49 = vadd.f32 %v1019_v45, %v893_v40  ;;  %v181_v40 = vld [vmem:[#allocation4 + $0x40] sm:$0xff]  ;;  %v908_v46 = vmul.f32 %v457_v36, %v104_v39 }
  0x8b   :  { %v465_v45 = vrot.slane %v181_v40, %v1210_v3 }
  0x8c   :  { %v1021_v53 = vadd.f32 %v1020_v49, %v894_v44  ;;  %v105_v44 = vld [vmem:[#allocation2 + $0x1f8] sm:$0xff]  ;;  %v469_v49 = vrot.slane %v181_v40, %v1212_v4 }
  0x8d   :  { %v909_v50 = vmul.f32 %v461_v41, %v105_v44  ;;  %v118_v41 = vld [vmem:[#allocation2 + $0x260] sm:$0xff] }
  0x8e   :  { %v1022_v57 = vadd.f32 %v1021_v53, %v895_v48  ;;  %v106_v48 = vld [vmem:[#allocation2 + $0x200] sm:$0xff]  ;;  %v473_v53 = vrot.slane %v181_v40, %v1214_v6 }
  0x8f   :  { %v910_v54 = vmul.f32 %v465_v45, %v106_v48  ;;  %v119_v45 = vld [vmem:[#allocation2 + $0x268] sm:$0xff] }
  0x90   :  { %v1023_v61 = vadd.f32 %v1022_v57, %v896_v52  ;;  %v107_v52 = vld [vmem:[#allocation2 + $0x208] sm:$0xff]  ;;  %v477_v57 = vrot.slane %v181_v40, %v1218_v9 }
  0x91   :  { %v911_v58 = vmul.f32 %v469_v49, %v107_v52  ;;  %v120_v49 = vld [vmem:[#allocation2 + $0x270] sm:$0xff] }
  0x92   :  { %v1024_v2 = vadd.f32 %v1023_v61, %v897_v56  ;;  %v108_v56 = vld [vmem:[#allocation2 + $0x210] sm:$0xff]  ;;  %v481_v61 = vrot.slane %v181_v40, %v1221_v13 }
  0x93   :  { %v912_v62 = vmul.f32 %v473_v53, %v108_v56 }
  0x94   :  { %v1025_v10 = vadd.f32 %v1024_v2, %v898_v60  ;;  %v109_v60 = vld [vmem:[#allocation2 + $0x218] sm:$0xff] }
  0x95   :  { %v913_v2 = vmul.f32 %v477_v57, %v109_v60 }
  0x96   :  { %v1026_v15 = vadd.f32 %v1025_v10, %v899_v1  ;;  %v485_v1 = vrot.slane %v181_v40, %v1224_v16  ;;  %v914_v10 = vmul.f32 %v481_v61, %v110_v0 }
  0x98   :  { %v1027_v20 = vadd.f32 %v1026_v15, %v900_v8  ;;  %v489_v8 = vrot.slane %v181_v40, %v1227_v21  ;;  %v493_v15 = vrot.slane %v181_v40, %v1230_v25  ;;  %v915_v17 = vmul.f32 %v485_v1, %v111_v7 }
  0x9a   :  { %v1028_v26 = vadd.f32 %v1027_v20, %v901_v14  ;;  %v182_v14 = vld [vmem:[#allocation4 + $0x48] sm:$0xff]  ;;  %v916_v22 = vmul.f32 %v489_v8, %v112_v12 }
  0x9b   :  { %v497_v20 = vrot.slane %v182_v14, %v1210_v3 }
  0x9c   :  { %v1029_v30 = vadd.f32 %v1028_v26, %v902_v19  ;;  %v113_v19 = vld [vmem:[#allocation2 + $0x238] sm:$0xff]  ;;  %v501_v26 = vrot.slane %v182_v14, %v1212_v4 }
  0x9d   :  { %v917_v27 = vmul.f32 %v493_v15, %v113_v19  ;;  %v126_v15 = vld [vmem:[#allocation2 + $0x2a0] sm:$0xff] }
  0x9e   :  { %v1030_v34 = vadd.f32 %v1029_v30, %v903_v24  ;;  %v114_v24 = vld [vmem:[#allocation2 + $0x240] sm:$0xff]  ;;  %v505_v30 = vrot.slane %v182_v14, %v1214_v6 }
  0x9f   :  { %v918_v31 = vmul.f32 %v497_v20, %v114_v24  ;;  %v127_v20 = vld [vmem:[#allocation2 + $0x2a8] sm:$0xff] }
  0xa0   :  { %v1031_v38 = vadd.f32 %v1030_v34, %v904_v29  ;;  %v115_v29 = vld [vmem:[#allocation2 + $0x248] sm:$0xff]  ;;  %v509_v34 = vrot.slane %v182_v14, %v1218_v9 }
  0xa1   :  { %v919_v35 = vmul.f32 %v501_v26, %v115_v29  ;;  %v128_v26 = vld [vmem:[#allocation2 + $0x2b0] sm:$0xff] }
  0xa2   :  { %v1032_v43 = vadd.f32 %v1031_v38, %v905_v33  ;;  %v116_v33 = vld [vmem:[#allocation2 + $0x250] sm:$0xff]  ;;  %v513_v38 = vrot.slane %v182_v14, %v1221_v13 }
  0xa3   :  { %v920_v39 = vmul.f32 %v505_v30, %v116_v33 }
  0xa4   :  { %v1033_v47 = vadd.f32 %v1032_v43, %v906_v37  ;;  %v117_v37 = vld [vmem:[#allocation2 + $0x258] sm:$0xff] }
  0xa5   :  { %v921_v43 = vmul.f32 %v509_v34, %v117_v37 }
  0xa6   :  { %v1034_v51 = vadd.f32 %v1033_v47, %v907_v42  ;;  %v517_v42 = vrot.slane %v182_v14, %v1224_v16  ;;  %v922_v47 = vmul.f32 %v513_v38, %v118_v41 }
  0xa8   :  { %v1035_v55 = vadd.f32 %v1034_v51, %v908_v46  ;;  %v521_v46 = vrot.slane %v182_v14, %v1227_v21  ;;  %v525_v51 = vrot.slane %v182_v14, %v1230_v25  ;;  %v923_v52 = vmul.f32 %v517_v42, %v119_v45 }
  0xaa   :  { %v1036_v59 = vadd.f32 %v1035_v55, %v909_v50  ;;  %v183_v50 = vld [vmem:[#allocation4 + $0x50] sm:$0xff]  ;;  %v924_v56 = vmul.f32 %v521_v46, %v120_v49 }
  0xab   :  { %v529_v55 = vrot.slane %v183_v50, %v1210_v3 }
  0xac   :  { %v1037_v63 = vadd.f32 %v1036_v59, %v910_v54  ;;  %v121_v54 = vld [vmem:[#allocation2 + $0x278] sm:$0xff]  ;;  %v533_v59 = vrot.slane %v183_v50, %v1212_v4 }
  0xad   :  { %v925_v60 = vmul.f32 %v525_v51, %v121_v54  ;;  %v134_v51 = vld [vmem:[#allocation2 + $0x2e0] sm:$0xff] }
  0xae   :  { %v1038_v5 = vadd.f32 %v1037_v63, %v911_v58  ;;  %v122_v58 = vld [vmem:[#allocation2 + $0x280] sm:$0xff]  ;;  %v537_v63 = vrot.slane %v183_v50, %v1214_v6 }
  0xaf   :  { %v926_v0 = vmul.f32 %v529_v55, %v122_v58  ;;  %v135_v55 = vld [vmem:[#allocation2 + $0x2e8] sm:$0xff] }
  0xb0   :  { %v1039_v11 = vadd.f32 %v1038_v5, %v912_v62  ;;  %v123_v62 = vld [vmem:[#allocation2 + $0x288] sm:$0xff]  ;;  %v541_v5 = vrot.slane %v183_v50, %v1218_v9 }
  0xb1   :  { %v927_v7 = vmul.f32 %v533_v59, %v123_v62  ;;  %v136_v59 = vld [vmem:[#allocation2 + $0x2f0] sm:$0xff] }
  0xb2   :  { %v1040_v18 = vadd.f32 %v1039_v11, %v913_v2  ;;  %v124_v2 = vld [vmem:[#allocation2 + $0x290] sm:$0xff]  ;;  %v545_v11 = vrot.slane %v183_v50, %v1221_v13 }
  0xb3   :  { %v928_v12 = vmul.f32 %v537_v63, %v124_v2 }
  0xb4   :  { %v1041_v23 = vadd.f32 %v1040_v18, %v914_v10  ;;  %v125_v10 = vld [vmem:[#allocation2 + $0x298] sm:$0xff] }
  0xb5   :  { %v929_v18 = vmul.f32 %v541_v5, %v125_v10 }
  0xb6   :  { %v1042_v28 = vadd.f32 %v1041_v23, %v915_v17  ;;  %v549_v17 = vrot.slane %v183_v50, %v1224_v16  ;;  %v930_v23 = vmul.f32 %v545_v11, %v126_v15 }
  0xb8   :  { %v1043_v32 = vadd.f32 %v1042_v28, %v916_v22  ;;  %v553_v22 = vrot.slane %v183_v50, %v1227_v21  ;;  %v557_v28 = vrot.slane %v183_v50, %v1230_v25  ;;  %v931_v29 = vmul.f32 %v549_v17, %v127_v20 }
  0xba   :  { %v1044_v36 = vadd.f32 %v1043_v32, %v917_v27  ;;  %v184_v27 = vld [vmem:[#allocation4 + $0x58] sm:$0xff]  ;;  %v932_v33 = vmul.f32 %v553_v22, %v128_v26 }
  0xbb   :  { %v561_v32 = vrot.slane %v184_v27, %v1210_v3 }
  0xbc   :  { %v1045_v40 = vadd.f32 %v1044_v36, %v918_v31  ;;  %v129_v31 = vld [vmem:[#allocation2 + $0x2b8] sm:$0xff]  ;;  %v565_v36 = vrot.slane %v184_v27, %v1212_v4 }
  0xbd   :  { %v933_v37 = vmul.f32 %v557_v28, %v129_v31  ;;  %v142_v28 = vld [vmem:[#allocation2 + $0x320] sm:$0xff] }
  0xbe   :  { %v1046_v44 = vadd.f32 %v1045_v40, %v919_v35  ;;  %v130_v35 = vld [vmem:[#allocation2 + $0x2c0] sm:$0xff]  ;;  %v569_v40 = vrot.slane %v184_v27, %v1214_v6 }
  0xbf   :  { %v934_v41 = vmul.f32 %v561_v32, %v130_v35  ;;  %v143_v32 = vld [vmem:[#allocation2 + $0x328] sm:$0xff] }
  0xc0   :  { %v1047_v48 = vadd.f32 %v1046_v44, %v920_v39  ;;  %v131_v39 = vld [vmem:[#allocation2 + $0x2c8] sm:$0xff]  ;;  %v573_v44 = vrot.slane %v184_v27, %v1218_v9 }
  0xc1   :  { %v935_v45 = vmul.f32 %v565_v36, %v131_v39  ;;  %v144_v36 = vld [vmem:[#allocation2 + $0x330] sm:$0xff] }
  0xc2   :  { %v1048_v53 = vadd.f32 %v1047_v48, %v921_v43  ;;  %v132_v43 = vld [vmem:[#allocation2 + $0x2d0] sm:$0xff]  ;;  %v577_v48 = vrot.slane %v184_v27, %v1221_v13 }
  0xc3   :  { %v936_v49 = vmul.f32 %v569_v40, %v132_v43 }
  0xc4   :  { %v1049_v57 = vadd.f32 %v1048_v53, %v922_v47  ;;  %v133_v47 = vld [vmem:[#allocation2 + $0x2d8] sm:$0xff] }
  0xc5   :  { %v937_v53 = vmul.f32 %v573_v44, %v133_v47 }
  0xc6   :  { %v1050_v61 = vadd.f32 %v1049_v57, %v923_v52  ;;  %v581_v52 = vrot.slane %v184_v27, %v1224_v16  ;;  %v938_v57 = vmul.f32 %v577_v48, %v134_v51 }
  0xc8   :  { %v1051_v1 = vadd.f32 %v1050_v61, %v924_v56  ;;  %v585_v56 = vrot.slane %v184_v27, %v1227_v21  ;;  %v589_v61 = vrot.slane %v184_v27, %v1230_v25  ;;  %v939_v62 = vmul.f32 %v581_v52, %v135_v55 }
  0xca   :  { %v1052_v8 = vadd.f32 %v1051_v1, %v925_v60  ;;  %v185_v60 = vld [vmem:[#allocation4 + $0x60] sm:$0xff]  ;;  %v940_v2 = vmul.f32 %v585_v56, %v136_v59 }
  0xcb   :  { %v593_v1 = vrot.slane %v185_v60, %v1210_v3 }
  0xcc   :  { %v1053_v14 = vadd.f32 %v1052_v8, %v926_v0  ;;  %v137_v0 = vld [vmem:[#allocation2 + $0x2f8] sm:$0xff]  ;;  %v597_v8 = vrot.slane %v185_v60, %v1212_v4 }
  0xcd   :  { %v941_v10 = vmul.f32 %v589_v61, %v137_v0  ;;  %v150_v61 = vld [vmem:[#allocation2 + $0x360] sm:$0xff] }
  0xce   :  { %v1054_v19 = vadd.f32 %v1053_v14, %v927_v7  ;;  %v138_v7 = vld [vmem:[#allocation2 + $0x300] sm:$0xff]  ;;  %v601_v14 = vrot.slane %v185_v60, %v1214_v6 }
  0xcf   :  { %v942_v15 = vmul.f32 %v593_v1, %v138_v7  ;;  %v151_v1 = vld [vmem:[#allocation2 + $0x368] sm:$0xff] }
  0xd0   :  { %v1055_v24 = vadd.f32 %v1054_v19, %v928_v12  ;;  %v139_v12 = vld [vmem:[#allocation2 + $0x308] sm:$0xff]  ;;  %v605_v19 = vrot.slane %v185_v60, %v1218_v9 }
  0xd1   :  { %v943_v20 = vmul.f32 %v597_v8, %v139_v12  ;;  %v152_v8 = vld [vmem:[#allocation2 + $0x370] sm:$0xff] }
  0xd2   :  { %v1056_v30 = vadd.f32 %v1055_v24, %v929_v18  ;;  %v140_v18 = vld [vmem:[#allocation2 + $0x310] sm:$0xff]  ;;  %v609_v24 = vrot.slane %v185_v60, %v1221_v13 }
  0xd3   :  { %v944_v26 = vmul.f32 %v601_v14, %v140_v18 }
  0xd4   :  { %v1057_v34 = vadd.f32 %v1056_v30, %v930_v23  ;;  %v141_v23 = vld [vmem:[#allocation2 + $0x318] sm:$0xff] }
  0xd5   :  { %v945_v30 = vmul.f32 %v605_v19, %v141_v23 }
  0xd6   :  { %v1058_v38 = vadd.f32 %v1057_v34, %v931_v29  ;;  %v613_v29 = vrot.slane %v185_v60, %v1224_v16  ;;  %v946_v34 = vmul.f32 %v609_v24, %v142_v28 }
  0xd8   :  { %v1059_v42 = vadd.f32 %v1058_v38, %v932_v33  ;;  %v617_v33 = vrot.slane %v185_v60, %v1227_v21  ;;  %v621_v38 = vrot.slane %v185_v60, %v1230_v25  ;;  %v947_v39 = vmul.f32 %v613_v29, %v143_v32 }
  0xda   :  { %v1060_v46 = vadd.f32 %v1059_v42, %v933_v37  ;;  %v186_v37 = vld [vmem:[#allocation4 + $0x68] sm:$0xff]  ;;  %v948_v43 = vmul.f32 %v617_v33, %v144_v36 }
  0xdb   :  { %v625_v42 = vrot.slane %v186_v37, %v1210_v3 }
  0xdc   :  { %v1061_v50 = vadd.f32 %v1060_v46, %v934_v41  ;;  %v145_v41 = vld [vmem:[#allocation2 + $0x338] sm:$0xff]  ;;  %v629_v46 = vrot.slane %v186_v37, %v1212_v4 }
  0xdd   :  { %v949_v47 = vmul.f32 %v621_v38, %v145_v41  ;;  %v158_v38 = vld [vmem:[#allocation2 + $0x3a0] sm:$0xff] }
  0xde   :  { %v1062_v54 = vadd.f32 %v1061_v50, %v935_v45  ;;  %v146_v45 = vld [vmem:[#allocation2 + $0x340] sm:$0xff]  ;;  %v633_v50 = vrot.slane %v186_v37, %v1214_v6 }
  0xdf   :  { %v950_v51 = vmul.f32 %v625_v42, %v146_v45  ;;  %v159_v42 = vld [vmem:[#allocation2 + $0x3a8] sm:$0xff] }
  0xe0   :  { %v1063_v58 = vadd.f32 %v1062_v54, %v936_v49  ;;  %v147_v49 = vld [vmem:[#allocation2 + $0x348] sm:$0xff]  ;;  %v637_v54 = vrot.slane %v186_v37, %v1218_v9 }
  0xe1   :  { %v951_v55 = vmul.f32 %v629_v46, %v147_v49  ;;  %v160_v46 = vld [vmem:[#allocation2 + $0x3b0] sm:$0xff] }
  0xe2   :  { %v1064_v63 = vadd.f32 %v1063_v58, %v937_v53  ;;  %v148_v53 = vld [vmem:[#allocation2 + $0x350] sm:$0xff]  ;;  %v641_v58 = vrot.slane %v186_v37, %v1221_v13 }
  0xe3   :  { %v952_v59 = vmul.f32 %v633_v50, %v148_v53 }
  0xe4   :  { %v1065_v5 = vadd.f32 %v1064_v63, %v938_v57  ;;  %v149_v57 = vld [vmem:[#allocation2 + $0x358] sm:$0xff] }
  0xe5   :  { %v953_v63 = vmul.f32 %v637_v54, %v149_v57 }
  0xe6   :  { %v1066_v11 = vadd.f32 %v1065_v5, %v939_v62  ;;  %v645_v62 = vrot.slane %v186_v37, %v1224_v16  ;;  %v954_v5 = vmul.f32 %v641_v58, %v150_v61 }
  0xe8   :  { %v1067_v17 = vadd.f32 %v1066_v11, %v940_v2  ;;  %v649_v2 = vrot.slane %v186_v37, %v1227_v21  ;;  %v653_v11 = vrot.slane %v186_v37, %v1230_v25  ;;  %v955_v12 = vmul.f32 %v645_v62, %v151_v1 }
  0xea   :  { %v1068_v22 = vadd.f32 %v1067_v17, %v941_v10  ;;  %v187_v10 = vld [vmem:[#allocation4 + $0x70] sm:$0xff]  ;;  %v956_v18 = vmul.f32 %v649_v2, %v152_v8 }
  0xeb   :  { %v657_v17 = vrot.slane %v187_v10, %v1210_v3 }
  0xec   :  { %v1069_v27 = vadd.f32 %v1068_v22, %v942_v15  ;;  %v153_v15 = vld [vmem:[#allocation2 + $0x378] sm:$0xff]  ;;  %v661_v22 = vrot.slane %v187_v10, %v1212_v4 }
  0xed   :  { %v957_v23 = vmul.f32 %v653_v11, %v153_v15 }
  0xee   :  { %v1070_v31 = vadd.f32 %v1069_v27, %v943_v20  ;;  %v154_v20 = vld [vmem:[#allocation2 + $0x380] sm:$0xff]  ;;  %v665_v27 = vrot.slane %v187_v10, %v1214_v6 }
  0xef   :  { %v958_v28 = vmul.f32 %v657_v17, %v154_v20 }
  0xf0   :  { %v1071_v35 = vadd.f32 %v1070_v31, %v944_v26  ;;  %v155_v26 = vld [vmem:[#allocation2 + $0x388] sm:$0xff]  ;;  %v669_v31 = vrot.slane %v187_v10, %v1218_v9 }
  0xf1   :  { %v959_v32 = vmul.f32 %v661_v22, %v155_v26  ;;  %v169_v22 = vld [vmem:[#allocation2 + $0x3f8] sm:$0xff] }
  0xf2   :  { %v1072_v40 = vadd.f32 %v1071_v35, %v945_v30  ;;  %v156_v30 = vld [vmem:[#allocation2 + $0x390] sm:$0xff]  ;;  %v673_v35 = vrot.slane %v187_v10, %v1221_v13 }
  0xf3   :  { %v960_v36 = vmul.f32 %v665_v27, %v156_v30 }
  0xf4   :  { %v1073_v44 = vadd.f32 %v1072_v40, %v946_v34  ;;  %v157_v34 = vld [vmem:[#allocation2 + $0x398] sm:$0xff] }
  0xf5   :  { %v961_v40 = vmul.f32 %v669_v31, %v157_v34 }
  0xf6   :  { %v1074_v48 = vadd.f32 %v1073_v44, %v947_v39  ;;  %v677_v39 = vrot.slane %v187_v10, %v1224_v16  ;;  %v962_v44 = vmul.f32 %v673_v35, %v158_v38 }
  0xf8   :  { %v1075_v52 = vadd.f32 %v1074_v48, %v948_v43  ;;  %v681_v43 = vrot.slane %v187_v10, %v1227_v21  ;;  %v685_v48 = vrot.slane %v187_v10, %v1230_v25  ;;  %v963_v49 = vmul.f32 %v677_v39, %v159_v42  ;;  %v166_v10 = vld [vmem:[#allocation2 + $0x3e0] sm:$0xff] }
  0xfa   :  { %v1076_v56 = vadd.f32 %v1075_v52, %v949_v47  ;;  %v188_v47 = vld [vmem:[#allocation4 + $0x78] sm:$0xff]  ;;  %v964_v53 = vmul.f32 %v681_v43, %v160_v46 }
  0xfb   :  { %v689_v52 = vrot.slane %v188_v47, %v1210_v3  ;;  %v705_v3 = vrot.slane %v188_v47, %v1221_v13 }
  0xfc   :  { %v1077_v60 = vadd.f32 %v1076_v56, %v950_v51  ;;  %v161_v51 = vld [vmem:[#allocation2 + $0x3b8] sm:$0xff]  ;;  %v693_v56 = vrot.slane %v188_v47, %v1212_v4  ;;  %v709_v4 = vrot.slane %v188_v47, %v1224_v16  ;;  %v189_v16 = vld [vmem:[%s1363_s2] sm:$0xff] }
  0xfd   :  { %v965_v57 = vmul.f32 %v685_v48, %v161_v51  ;;  %v970_v15 = vmul.f32 %v705_v3, %v166_v10 }
  0xfe   :  { %v1078_v0 = vadd.f32 %v1077_v60, %v951_v55  ;;  %v162_v55 = vld [vmem:[#allocation2 + $0x3c0] sm:$0xff]  ;;  %v697_v60 = vrot.slane %v188_v47, %v1214_v6  ;;  %v713_v6 = vrot.slane %v188_v47, %v1227_v21 }
  0xff   :  { %v966_v61 = vmul.f32 %v689_v52, %v162_v55 }
 0x100   :  { %v1079_v7 = vadd.f32 %v1078_v0, %v952_v59  ;;  %v163_v59 = vld [vmem:[#allocation2 + $0x3c8] sm:$0xff]  ;;  %v701_v0 = vrot.slane %v188_v47, %v1218_v9  ;;  %v717_v9 = vrot.slane %v188_v47, %v1230_v25 }
 0x101   :  { %v967_v1 = vmul.f32 %v693_v56, %v163_v59 }
 0x102   :  { %v1080_v14 = vadd.f32 %v1079_v7, %v953_v63  ;;  %v164_v63 = vld [vmem:[#allocation2 + $0x3d0] sm:$0xff] }
 0x103   :  { %v968_v7 = vmul.f32 %v697_v60, %v164_v63 }
 0x104   :  { %v1081_v19 = vadd.f32 %v1080_v14, %v954_v5  ;;  %v165_v5 = vld [vmem:[#allocation2 + $0x3d8] sm:$0xff]  ;;  %v167_v14 = vld [vmem:[#allocation2 + $0x3e8] sm:$0xff] }
 0x105   :  { %v969_v11 = vmul.f32 %v701_v0, %v165_v5 }
 0x106   :  { %v1082_v24 = vadd.f32 %v1081_v19, %v955_v12  ;;  %v971_v19 = vmul.f32 %v709_v4, %v167_v14 }
 0x108   :  { %v1083_v29 = vadd.f32 %v1082_v24, %v956_v18  ;;  %v168_v18 = vld [vmem:[#allocation2 + $0x3f0] sm:$0xff]  ;;  %v973_v24 = vmul.f32 %v717_v9, %v169_v22 }
 0x10a   :  { %v1084_v33 = vadd.f32 %v1083_v29, %v957_v23  ;;  %v972_v23 = vmul.f32 %v713_v6, %v168_v18 }
 0x10c   :  { %v1085_v37 = vadd.f32 %v1084_v33, %v958_v28 }
 0x10e   :  { %v1086_v41 = vadd.f32 %v1085_v37, %v959_v32 }
 0x110   :  { %v1087_v45 = vadd.f32 %v1086_v41, %v960_v36 }
 0x112   :  { %v1088_v50 = vadd.f32 %v1087_v45, %v961_v40 }
 0x114   :  { %v1089_v54 = vadd.f32 %v1088_v50, %v962_v44 }
 0x116   :  { %v1090_v58 = vadd.f32 %v1089_v54, %v963_v49 }
 0x118   :  { %v1091_v62 = vadd.f32 %v1090_v58, %v964_v53 }
 0x11a   :  { %v1092_v2 = vadd.f32 %v1091_v62, %v965_v57 }
 0x11c   :  { %v1093_v8 = vadd.f32 %v1092_v2, %v966_v61 }
 0x11e   :  { %v1094_v12 = vadd.f32 %v1093_v8, %v967_v1 }
 0x120   :  { %v1095_v17 = vadd.f32 %v1094_v12, %v968_v7 }
 0x122   :  { %v1096_v20 = vadd.f32 %v1095_v17, %v969_v11 }
 0x124   :  { %v1097_v13 = vadd.f32 %v1096_v20, %v970_v15 }
 0x126   :  { %v1098_v26 = vadd.f32 %v1097_v13, %v971_v19 }
 0x128   :  { %v1099_v27 = vadd.f32 %v1098_v26, %v972_v23 }
 0x12a   :  { %v1100_v28 = vadd.f32 %v1099_v27, %v973_v24 }
 0x12c   :  { %1101 = vadd.xlane.f32.xlu0 %v1100_v28 }
 0x1b9   :  { %v1102_v21 = vpop.xlane.xlu0 %1101 }
 0x1ba   :  { %v1103_v29 = vadd.f32 %v1102_v21, %v189_v16 }
 0x1bc   :  { %1105 = vst.msk [vmem:[%s1363_s2] sm:$0xff] %vm39_vm0, %v1103_v29 }
 0x1bd   :  { %1110 = vsyncpa [#allocation3], 1 }
 0x1be   :  { %1111 = vsyncpa [#allocation5], 1 }

</bundles_post_ra>
